<compile_context>
chip_gen: v7x
topology: tpu7x:2x2x1
jax: 0.10.0
libtpu: 0.0.40
codegen_flags: <defaults>
</compile_context>

<pallas_src>
import jax
import jax.numpy as jnp
from jax.experimental import pallas as pl
from jax.experimental.pallas import tpu as pltpu

NO_OF_EMOTIONS = 6

_LANES = 128
_SUBLANES = 8
_PIPELINE_VMEM_BUDGET = 24 * 1024 * 1024   # bytes for pipeline buffers (< vmem limit)
_DMA_TARGET_BYTES = 4 * 1024 * 1024        # aim for >= ~4 MiB of HBM traffic per step
_VMEM_LIMIT_BYTES = 32 * 1024 * 1024       # explicit scoped-VMEM limit (v5e default is 16 MiB)


def _round_up(v, m):
    return ((v + m - 1) // m) * m


def _pick_batch_tile(B, H, e_w, e_out, x_dtype, out_dtype, w_dtype):
    """Batch-tile rows (multiple of 8), sized from streamed bytes + VMEM fit."""
    x_b = jnp.dtype(x_dtype).itemsize
    o_b = jnp.dtype(out_dtype).itemsize
    w_b = jnp.dtype(w_dtype).itemsize

    # VMEM footprint per batch row: x and out tiles are lane-padded to 128 in VMEM
    # and double-buffered by the BlockSpec pipeline.
    row_vmem = 2 * _round_up(H, _LANES) * x_b + 2 * _round_up(e_out, _LANES) * o_b
    # Pinned weight + bias; conservatively budget two copies (double-buffer fallback).
    resident = 2 * (_round_up(H, _SUBLANES) * e_w * w_b + _SUBLANES * e_w * w_b)
    avail = max(_PIPELINE_VMEM_BUDGET - resident, _SUBLANES * row_vmem)
    tm_fit = max(_SUBLANES, (avail // row_vmem) // _SUBLANES * _SUBLANES)

    # Rows needed so each grid step streams >= _DMA_TARGET_BYTES of real HBM traffic
    # (x read + narrow output write; the weight is fetched only once overall).
    row_stream = H * x_b + e_out * o_b
    tm_dma = _round_up(max(1, -(-_DMA_TARGET_BYTES // row_stream)), _SUBLANES)

    tm = min(tm_fit, tm_dma)
    tm = min(tm, _round_up(B, _SUBLANES))              # never exceed the batch
    if B > 2 * _SUBLANES:                              # >= 2 tiles -> both v7x TCs run
        tm = min(tm, _round_up(-(-B // 2), _SUBLANES))
    return max(_SUBLANES, tm)


def _linear_kernel(x_ref, w_ref, b_ref, o_ref):
    # x_ref: [TM, H], w_ref: [H, E_w], b_ref: [1, E_w], o_ref: [TM, E_out] (E_out <= E_w)
    acc = jnp.dot(x_ref[...], w_ref[...], preferred_element_type=jnp.float32)
    acc = acc + b_ref[...].astype(jnp.float32)
    # Narrow store: only the valid E_out lanes go back to HBM.
    o_ref[...] = acc[:, : o_ref.shape[-1]].astype(o_ref.dtype)


def prepare_params(w_t, b):
    """One-time layout prep: lane-pad weight/bias to a multiple of 128 lanes so the
    MXU matmul is lane-dense.  The zero-padded lanes never reach the (B, E) output."""
    H, E = w_t.shape
    assert b.shape == (E,)
    e_w = _round_up(max(E, _LANES), _LANES)
    w_p = jnp.pad(w_t, ((0, 0), (0, e_w - E))) if e_w != E else w_t
    b_p = (jnp.pad(b, (0, e_w - E)) if e_w != E else b).reshape(1, e_w)
    return w_p, b_p


def predictor_forward(x, w_p, b_p, out_features):
    """y = x @ w_t + b, matching nn.Linear(hidden_size, no_of_emotions).forward.

    x: [B, H]; w_p: [H, E_w] lane-padded weight; b_p: [1, E_w]; returns [B, out_features].
    """
    B, H = x.shape
    Hw, e_w = w_p.shape
    assert H == Hw and b_p.shape == (1, e_w) and out_features <= e_w

    out_dtype = x.dtype
    tm = _pick_batch_tile(B, H, e_w, out_features, x.dtype, out_dtype, w_p.dtype)
    grid = (pl.cdiv(B, tm),)

    cost = pl.CostEstimate(
        flops=2 * B * H * e_w,
        transcendentals=0,
        bytes_accessed=(x.size * jnp.dtype(x.dtype).itemsize
                        + w_p.size * jnp.dtype(w_p.dtype).itemsize
                        + b_p.size * jnp.dtype(b_p.dtype).itemsize
                        + B * out_features * jnp.dtype(out_dtype).itemsize),
    )

    def call(single_buffer_pins):
        # Weight/bias are pinned at block (0,0): fetched once.  Single-buffer them
        # when the build supports pl.Buffered(1) to avoid a useless second VMEM copy.
        pin_kw = dict(pipeline_mode=pl.Buffered(1)) if single_buffer_pins else {}
        return pl.pallas_call(
            _linear_kernel,
            out_shape=jax.ShapeDtypeStruct((B, out_features), out_dtype),
            grid=grid,
            in_specs=[
                pl.BlockSpec((tm, H), lambda i: (i, 0)),              # x streamed over batch
                pl.BlockSpec((H, e_w), lambda i: (0, 0), **pin_kw),   # weight VMEM-resident
                pl.BlockSpec((1, e_w), lambda i: (0, 0), **pin_kw),   # bias VMEM-resident
            ],
            out_specs=pl.BlockSpec((tm, out_features), lambda i: (i, 0)),
            compiler_params=pltpu.CompilerParams(
                dimension_semantics=("parallel",),      # batch tiles shard across v7x TCs
                vmem_limit_bytes=_VMEM_LIMIT_BYTES,
            ),
            cost_estimate=cost,
        )(x, w_p, b_p)

    try:
        return call(True)
    except Exception:
        # pipeline_mode=pl.Buffered(1) unsupported on this jax build: fall back to the
        # default double-buffered pipeline (pinned blocks are still only fetched once).
        return call(False)


def init_params(key, hidden_size, no_of_emotions, dtype=jnp.float32):
    """Deterministic init mimicking PyTorch nn.Linear default (uniform +/- 1/sqrt(H))."""
    k_w, k_b = jax.random.split(key)
    bound = 1.0 / jnp.sqrt(hidden_size)
    # PyTorch stores weight as [E, H]; keep the transposed layout [H, E] for the kernel.
    w_t = jax.random.uniform(k_w, (hidden_size, no_of_emotions),
                             minval=-bound, maxval=bound, dtype=dtype)
    b = jax.random.uniform(k_b, (no_of_emotions,),
                           minval=-bound, maxval=bound, dtype=dtype)
    return w_t, b


if __name__ == "__main__":
    batch = 8
    hidden_size = 32

    key = jax.random.PRNGKey(0)
    k_x, k_p = jax.random.split(key)

    x = jax.random.normal(k_x, (batch, hidden_size), dtype=jnp.float32)
    w_t, b = init_params(k_p, hidden_size, NO_OF_EMOTIONS)
    w_p, b_p = prepare_params(w_t, b)        # one-time layout prep (not per forward)

    y = predictor_forward(x, w_p, b_p, NO_OF_EMOTIONS)
    y = jax.block_until_ready(y)

    # Cross-check against plain JAX reference.
    y_ref = x @ w_t + b
    assert y.shape == (batch, NO_OF_EMOTIONS)
    assert jnp.allclose(y, y_ref, atol=1e-5, rtol=1e-5)

    print("KERNEL_OK")
</pallas_src>

<mosaic_0001>
module attributes {stable_mosaic.version = 11 : i64} {
  func.func @_linear_kernel(%arg0: i32, %arg1: memref<8x32xf32, #tpu.memory_space<vmem>>, %arg2: memref<32x128xf32, #tpu.memory_space<vmem>>, %arg3: memref<1x128xf32, #tpu.memory_space<vmem>>, %arg4: memref<8x6xf32, #tpu.memory_space<vmem>>) attributes {dimension_semantics = [#tpu.dimension_semantics<parallel>], iteration_bounds = array<i64: 1>, scalar_prefetch = 0 : i64, scratch_operands = 0 : i64, tpu.core_type = #tpu.core_type<tc>, window_params = [{transform_indices = @transform_0, window_bounds = array<i64: 8, 32>}, {pipeline_mode = #tpu.pipeline_mode<synchronous>, transform_indices = @transform_1, window_bounds = array<i64: 32, 128>}, {pipeline_mode = #tpu.pipeline_mode<synchronous>, transform_indices = @transform_2, window_bounds = array<i64: 1, 128>}, {transform_indices = @transform_3, window_bounds = array<i64: 8, 6>}]} {
    %c0 = arith.constant 0 : index
    %c0_0 = arith.constant 0 : index
    %0 = vector.load %arg1[%c0, %c0_0] : memref<8x32xf32, #tpu.memory_space<vmem>>, vector<8x32xf32>
    %c0_1 = arith.constant 0 : index
    %c0_2 = arith.constant 0 : index
    %1 = vector.load %arg2[%c0_1, %c0_2] : memref<32x128xf32, #tpu.memory_space<vmem>>, vector<32x128xf32>
    %cst = arith.constant dense<0.000000e+00> : vector<8x128xf32>
    %2 = tpu.matmul %0, %1, %cst {dimension_numbers = #tpu.dot_dimension_numbers<[1], [0], [0], [1], [0, 0, 1, 1], [], []>} : vector<8x32xf32>, vector<32x128xf32>, vector<8x128xf32> -> vector<8x128xf32>
    %c0_3 = arith.constant 0 : index
    %c0_4 = arith.constant 0 : index
    %3 = vector.load %arg3[%c0_3, %c0_4] : memref<1x128xf32, #tpu.memory_space<vmem>>, vector<1x128xf32>
    %4 = vector.broadcast %3 : vector<1x128xf32> to vector<8x128xf32>
    %5 = arith.addf %2, %4 : vector<8x128xf32>
    %6 = vector.extract_strided_slice %5 {offsets = [0, 0], sizes = [8, 6], strides = [1, 1]} : vector<8x128xf32> to vector<8x6xf32>
    %c0_5 = arith.constant 0 : index
    %c0_6 = arith.constant 0 : index
    %7 = vector.load %arg4[%c0_5, %c0_6] : memref<8x6xf32, #tpu.memory_space<vmem>>, vector<8x6xf32>
    tpu.vector_store %arg4[%c0_5, %c0_6], %6 {strides = array<i32>} : memref<8x6xf32, #tpu.memory_space<vmem>>, vector<8x6xf32>,
    return
  }
  func.func @transform_0(%arg0: i32) -> (i32, i32) {
    %c0_i32 = arith.constant 0 : i32
    %c0_i32_0 = arith.constant 0 : i32
    return %arg0, %c0_i32 : i32, i32
  }
  func.func @transform_1(%arg0: i32) -> (i32, i32) {
    %c0_i32 = arith.constant 0 : i32
    %c0_i32_0 = arith.constant 0 : i32
    %c0_i32_1 = arith.constant 0 : i32
    return %c0_i32, %c0_i32_0 : i32, i32
  }
  func.func @transform_2(%arg0: i32) -> (i32, i32) {
    %c0_i32 = arith.constant 0 : i32
    %c0_i32_0 = arith.constant 0 : i32
    %c0_i32_1 = arith.constant 0 : i32
    return %c0_i32, %c0_i32_0 : i32, i32
  }
  func.func @transform_3(%arg0: i32) -> (i32, i32) {
    %c0_i32 = arith.constant 0 : i32
    %c0_i32_0 = arith.constant 0 : i32
    return %arg0, %c0_i32 : i32, i32
  }
}

module attributes {stable_mosaic.version = 11 : i64} {
  func.func @_linear_kernel(%arg0: i32, %arg1: memref<8x32xf32, #tpu.memory_space<vmem>>, %arg2: memref<32x128xf32, #tpu.memory_space<vmem>>, %arg3: memref<1x128xf32, #tpu.memory_space<vmem>>, %arg4: memref<8x6xf32, #tpu.memory_space<vmem>>) attributes {dimension_semantics = [#tpu.dimension_semantics<parallel>], iteration_bounds = array<i64: 1>, scalar_prefetch = 0 : i64, scratch_operands = 0 : i64, tpu.core_type = #tpu.core_type<tc>, window_params = [{transform_indices = @transform_0, window_bounds = array<i64: 8, 32>}, {pipeline_mode = #tpu.pipeline_mode<synchronous>, transform_indices = @transform_1, window_bounds = array<i64: 32, 128>}, {pipeline_mode = #tpu.pipeline_mode<synchronous>, transform_indices = @transform_2, window_bounds = array<i64: 1, 128>}, {transform_indices = @transform_3, window_bounds = array<i64: 8, 6>}]} {
    %c0 = arith.constant 0 : index
    %c0_0 = arith.constant 0 : index
    %0 = vector.load %arg1[%c0, %c0_0] : memref<8x32xf32, #tpu.memory_space<vmem>>, vector<8x32xf32>
    %c0_1 = arith.constant 0 : index
    %c0_2 = arith.constant 0 : index
    %1 = vector.load %arg2[%c0_1, %c0_2] : memref<32x128xf32, #tpu.memory_space<vmem>>, vector<32x128xf32>
    %cst = arith.constant dense<0.000000e+00> : vector<8x128xf32>
    %2 = tpu.matmul %0, %1, %cst {dimension_numbers = #tpu.dot_dimension_numbers<[1], [0], [0], [1], [0, 0, 1, 1], [], []>} : vector<8x32xf32>, vector<32x128xf32>, vector<8x128xf32> -> vector<8x128xf32>
    %c0_3 = arith.constant 0 : index
    %c0_4 = arith.constant 0 : index
    %3 = vector.load %arg3[%c0_3, %c0_4] : memref<1x128xf32, #tpu.memory_space<vmem>>, vector<1x128xf32>
    %4 = vector.broadcast %3 : vector<1x128xf32> to vector<8x128xf32>
    %5 = arith.addf %2, %4 : vector<8x128xf32>
    %6 = vector.extract_strided_slice %5 {offsets = [0, 0], sizes = [8, 6], strides = [1, 1]} : vector<8x128xf32> to vector<8x6xf32>
    %c0_5 = arith.constant 0 : index
    %c0_6 = arith.constant 0 : index
    %7 = vector.load %arg4[%c0_5, %c0_6] : memref<8x6xf32, #tpu.memory_space<vmem>>, vector<8x6xf32>
    tpu.vector_store %arg4[%c0_5, %c0_6], %6 {strides = array<i32>} : memref<8x6xf32, #tpu.memory_space<vmem>>, vector<8x6xf32>,
    return
  }
  func.func @transform_0(%arg0: i32) -> (i32, i32) {
    %c0_i32 = arith.constant 0 : i32
    %c0_i32_0 = arith.constant 0 : i32
    return %arg0, %c0_i32 : i32, i32
  }
  func.func @transform_1(%arg0: i32) -> (i32, i32) {
    %c0_i32 = arith.constant 0 : i32
    %c0_i32_0 = arith.constant 0 : i32
    %c0_i32_1 = arith.constant 0 : i32
    return %c0_i32, %c0_i32_0 : i32, i32
  }
  func.func @transform_2(%arg0: i32) -> (i32, i32) {
    %c0_i32 = arith.constant 0 : i32
    %c0_i32_0 = arith.constant 0 : i32
    %c0_i32_1 = arith.constant 0 : i32
    return %c0_i32, %c0_i32_0 : i32, i32
  }
  func.func @transform_3(%arg0: i32) -> (i32, i32) {
    %c0_i32 = arith.constant 0 : i32
    %c0_i32_0 = arith.constant 0 : i32
    return %arg0, %c0_i32 : i32, i32
  }
}

</mosaic_0001>

<bundles_post_ra>
// kernel: tpu_custom_call.1
= control target key start
LH: loop header
LB: loop body
LE: loop exit
PB: predicated region body
PF: predicated region fallthrough
CT: control target
= control target key end

     0   :  { %8 = vsyncpa [#allocation3], 0  ;;  %s323_s0 = inlined_call_operand.hbm [shape: f32[8,32], index: 0, kind: input, shape index: {}]   ;;  %s324_s1 = inlined_call_operand.hbm [shape: f32[32,128], index: 1, kind: input, shape index: {}]   ;;  %s325_s2 = inlined_call_operand.vmem [shape: f32[1,128], index: 2, kind: input, shape index: {}]   ;;  %s326_s3 = inlined_call_operand.hbm [shape: f32[8,6], index: 3, kind: output, shape index: {}]  }
   0x1   :  { %9 = vsyncpa [#allocation6], 0 }
   0x2   :  { %10 = vsyncpa [#allocation4], 0  ;;  %s249_s12 = smov [#allocation2]   ;;  %s250_s14 = smov [#allocation5]  }
   0x3   :  { %s17_s13 = sshll.u32 %s249_s12, 4  ;;  %s26_s15 = sshll.u32 %s250_s14, 4  ;;  %s18_s13 = int_to_ptr.vmem [resolvable:$true] %s17_s13  ;;  %s277_s15 = int_to_ptr.vmem [resolvable:$true] %s26_s15 }
   0x4   :  { %s177_s18 = scalar_lea.hbm %s323_s0, 128 }
   0x5   :  { %p178_p0 = scmp.ne.s32.totalorder %s323_s0, %s177_s18  ;;  %p181_p1 = scmp.lt.u32.totalorder %s177_s18, %s323_s0 }
   0x7   :  { %p183_p2 = pnand %p181_p1, %p178_p0 }
   0x9   :  { %186 = shalt.err (!%p183_p2)
}
   0xa   :  { %s187_s23 = scalar_lea.vmem %s18_s13, 128  ;;  %p192_p4 = scmp.lt.s32.totalorder %s18_s13, %s18_s13 }
   0xb   :  { %p188_p3 = scmp.ne.s32.totalorder %s18_s13, %s187_s23  ;;  %p193_p5 = scmp.lt.s32.totalorder %s187_s23, %s187_s23 }
   0xd   :  { %p194_p6 = por %p193_p5, %p192_p4 }
   0xf   :  { %p195_p7 = pnand %p194_p6, %p188_p3 }
  0x11   :  { %198 = shalt.err (!%p195_p7)
}
  0x12   :  { %20 = dma.hbm_to_vmem [thread:$0]  %s323_s0, 128, %s18_s13, [#allocation3]  }
  0x13   :  { %s199_s28 = scalar_lea.hbm %s324_s1, 512 }
  0x14   :  { %p200_p8 = scmp.ne.s32.totalorder %s324_s1, %s199_s28  ;;  %p203_p9 = scmp.lt.u32.totalorder %s199_s28, %s324_s1 }
  0x16   :  { %p205_p10 = pnand %p203_p9, %p200_p8 }
  0x18   :  { %208 = shalt.err (!%p205_p10)
}
  0x19   :  { %s209_s6 = scalar_lea.vmem %s277_s15, 512  ;;  %p214_p12 = scmp.lt.s32.totalorder %s277_s15, %s277_s15 }
  0x1a   :  { %p210_p11 = scmp.ne.s32.totalorder %s277_s15, %s209_s6  ;;  %p215_p13 = scmp.lt.s32.totalorder %s209_s6, %s209_s6 }
  0x1c   :  { %p216_p0 = por %p215_p13, %p214_p12 }
  0x1e   :  { %p217_p1 = pnand %p216_p0, %p210_p11 }
  0x20   :  { %220 = shalt.err (!%p217_p1)
}
  0x21   :  { %s251_s0 = smov 128   ;;  %s252_s7 = smov 8  }
  0x22   :  { %32 = dma.hbm_to_vmem [thread:$0]  %s324_s1, 512, %s277_s15, [#allocation6], %s251_s0, %s251_s0, %s252_s7  }
  0x23   :  { %243 = dma.done.wait [#allocation3], 128  }
  0x24   :  { %244 = vsyncadd [#allocation3], 4294967168 }
  0x25   :  { %245 = dma.done.wait [#allocation6], 512  }
  0x26   :  { %246 = vsyncadd [#allocation6], 4294966784  ;;  %v253_v0 = vmov 0.0|0.0   ;;  %vm254_vm0 = vmmov 0   ;;  %v255_v1 = vmov 0.0   ;;  %v42_v2 = vld [vmem:[#allocation5] sm:$0xff] }
  0x27   :  { %163 = vmatprep.subr.bf16.mxu0 %v253_v0  ;;  %160 = vmatprep.mubr.msk.f32.mxu0 %vm254_vm0, %v255_v1  ;;  %v43_v3 = vld [vmem:[#allocation5 + $0x8] sm:$0xff]  ;;  %v44_v4 = vld [vmem:[#allocation5 + $0x10] sm:$0xff]  ;;  %v45_v6 = vld [vmem:[#allocation5 + $0x18] sm:$0xff]  ;;  %vm53_vm1 = vcmask 261120   ;;  %s256_s11 = smov [#allocation7]   ;;  %vm127_vm2 = vcmask 48128  }
  0x28   :  { %v164_v5 = vpack.c.bf16 %v43_v3, %v42_v2  ;;  %v167_v7 = vpack.c.bf16 %v45_v6, %v44_v4  ;;  %v41_v8 = vld [vmem:[#allocation2] sm:$0xff]  ;;  %s135_s12 = sshll.u32 %s256_s11, 4  ;;  %s136_s12 = int_to_ptr.vmem [resolvable:$true] %s135_s12 }
  0x29   :  { %v145_v9 = vld [vmem:[%s325_s2] ss:$0 sm:$0xff]  ;;  %s221_s13 = scalar_lea.vmem %s136_s12, 128  ;;  %p226_p3 = scmp.lt.s32.totalorder %s136_s12, %s136_s12 }
  0x2a   :  { %165 = vmatpush3.bf16.msra.mxu0 %v164_v5  ;;  %p222_p2 = scmp.ne.s32.totalorder %s136_s12, %s221_s13  ;;  %p227_p4 = scmp.lt.s32.totalorder %s221_s13, %s221_s13 }
  0x2b   :  { %166 = vmatprep.subr.bf16.mxu0 %v253_v0 }
  0x2c   :  { %p228_p5 = por %p227_p4, %p226_p3 }
  0x2e   :  { %168 = vmatpush3.bf16.msra.mxu0 %v167_v7  ;;  %p229_p6 = pnand %p228_p5, %p222_p2 }
  0x31   :  { %161 = vmatmul.mubr.msk.f32.vlgmr.msra.gmra.mrb[0].mxu0 %vm53_vm1, %v41_v8 }
 0x104   :  { %v123_v10 = vpop.f32.mrb[0].mxu0 }
 0x105   :  { %v124_v11 = vadd.f32 %v145_v9, %v123_v10  ;;  %v162_v12 = vpop.f32.mrb[1].mxu0 }
 0x107   :  { %128 = vst.msk [vmem:[#allocation7] sm:$0xff] %vm127_vm2, %v124_v11 }
 0x108   :  { %232 = shalt.err (!%p229_p6)
}
 0x109   :  { %s233_s16 = scalar_lea.hbm %s326_s3, 128 }
 0x10a   :  { %p234_p7 = scmp.ne.s32.totalorder %s326_s3, %s233_s16  ;;  %p237_p8 = scmp.lt.u32.totalorder %s233_s16, %s326_s3 }
 0x10c   :  { %p239_p9 = pnand %p237_p8, %p234_p7 }
 0x10e   :  { %242 = shalt.err (!%p239_p9)
}
 0x10f   :  { %138 = dma.vmem_to_hbm [thread:$0]  %s136_s12, 128, %s326_s3, [#allocation4]  }
 0x110   :  { %247 = dma.done.wait [#allocation4], 128  }
 0x111   :  { %248 = vsyncadd [#allocation4], 4294967168 }
 0x112   :  { %142 = vsyncpa [#allocation3], 1 }
 0x113   :  { %143 = vsyncpa [#allocation6], 1 }
 0x114   :  { %144 = vsyncpa [#allocation4], 1 }

// kernel: tpu_custom_call.1
= control target key start
LH: loop header
LB: loop body
LE: loop exit
PB: predicated region body
PF: predicated region fallthrough
CT: control target
= control target key end

     0   :  { %8 = vsyncpa [#allocation3], 0  ;;  %s323_s0 = inlined_call_operand.hbm [shape: f32[8,32], index: 0, kind: input, shape index: {}]   ;;  %s324_s1 = inlined_call_operand.hbm [shape: f32[32,128], index: 1, kind: input, shape index: {}]   ;;  %s325_s2 = inlined_call_operand.vmem [shape: f32[1,128], index: 2, kind: input, shape index: {}]   ;;  %s326_s3 = inlined_call_operand.hbm [shape: f32[8,6], index: 3, kind: output, shape index: {}]  }
   0x1   :  { %9 = vsyncpa [#allocation6], 0 }
   0x2   :  { %10 = vsyncpa [#allocation4], 0  ;;  %s249_s12 = smov [#allocation2]   ;;  %s250_s14 = smov [#allocation5]  }
   0x3   :  { %s17_s13 = sshll.u32 %s249_s12, 4  ;;  %s26_s15 = sshll.u32 %s250_s14, 4  ;;  %s18_s13 = int_to_ptr.vmem [resolvable:$true] %s17_s13  ;;  %s277_s15 = int_to_ptr.vmem [resolvable:$true] %s26_s15 }
   0x4   :  { %s177_s18 = scalar_lea.hbm %s323_s0, 128 }
   0x5   :  { %p178_p0 = scmp.ne.s32.totalorder %s323_s0, %s177_s18  ;;  %p181_p1 = scmp.lt.u32.totalorder %s177_s18, %s323_s0 }
   0x7   :  { %p183_p2 = pnand %p181_p1, %p178_p0 }
   0x9   :  { %186 = shalt.err (!%p183_p2)
}
   0xa   :  { %s187_s23 = scalar_lea.vmem %s18_s13, 128  ;;  %p192_p4 = scmp.lt.s32.totalorder %s18_s13, %s18_s13 }
   0xb   :  { %p188_p3 = scmp.ne.s32.totalorder %s18_s13, %s187_s23  ;;  %p193_p5 = scmp.lt.s32.totalorder %s187_s23, %s187_s23 }
   0xd   :  { %p194_p6 = por %p193_p5, %p192_p4 }
   0xf   :  { %p195_p7 = pnand %p194_p6, %p188_p3 }
  0x11   :  { %198 = shalt.err (!%p195_p7)
}
  0x12   :  { %20 = dma.hbm_to_vmem [thread:$0]  %s323_s0, 128, %s18_s13, [#allocation3]  }
  0x13   :  { %s199_s28 = scalar_lea.hbm %s324_s1, 512 }
  0x14   :  { %p200_p8 = scmp.ne.s32.totalorder %s324_s1, %s199_s28  ;;  %p203_p9 = scmp.lt.u32.totalorder %s199_s28, %s324_s1 }
  0x16   :  { %p205_p10 = pnand %p203_p9, %p200_p8 }
  0x18   :  { %208 = shalt.err (!%p205_p10)
}
  0x19   :  { %s209_s6 = scalar_lea.vmem %s277_s15, 512  ;;  %p214_p12 = scmp.lt.s32.totalorder %s277_s15, %s277_s15 }
  0x1a   :  { %p210_p11 = scmp.ne.s32.totalorder %s277_s15, %s209_s6  ;;  %p215_p13 = scmp.lt.s32.totalorder %s209_s6, %s209_s6 }
  0x1c   :  { %p216_p0 = por %p215_p13, %p214_p12 }
  0x1e   :  { %p217_p1 = pnand %p216_p0, %p210_p11 }
  0x20   :  { %220 = shalt.err (!%p217_p1)
}
  0x21   :  { %s251_s0 = smov 128   ;;  %s252_s7 = smov 8  }
  0x22   :  { %32 = dma.hbm_to_vmem [thread:$0]  %s324_s1, 512, %s277_s15, [#allocation6], %s251_s0, %s251_s0, %s252_s7  }
  0x23   :  { %243 = dma.done.wait [#allocation3], 128  }
  0x24   :  { %244 = vsyncadd [#allocation3], 4294967168 }
  0x25   :  { %245 = dma.done.wait [#allocation6], 512  }
  0x26   :  { %246 = vsyncadd [#allocation6], 4294966784  ;;  %v253_v0 = vmov 0.0|0.0   ;;  %vm254_vm0 = vmmov 0   ;;  %v255_v1 = vmov 0.0   ;;  %v42_v2 = vld [vmem:[#allocation5] sm:$0xff] }
  0x27   :  { %163 = vmatprep.subr.bf16.mxu0 %v253_v0  ;;  %160 = vmatprep.mubr.msk.f32.mxu0 %vm254_vm0, %v255_v1  ;;  %v43_v3 = vld [vmem:[#allocation5 + $0x8] sm:$0xff]  ;;  %v44_v4 = vld [vmem:[#allocation5 + $0x10] sm:$0xff]  ;;  %v45_v6 = vld [vmem:[#allocation5 + $0x18] sm:$0xff]  ;;  %vm53_vm1 = vcmask 261120   ;;  %s256_s11 = smov [#allocation7]   ;;  %vm127_vm2 = vcmask 48128  }
  0x28   :  { %v164_v5 = vpack.c.bf16 %v43_v3, %v42_v2  ;;  %v167_v7 = vpack.c.bf16 %v45_v6, %v44_v4  ;;  %v41_v8 = vld [vmem:[#allocation2] sm:$0xff]  ;;  %s135_s12 = sshll.u32 %s256_s11, 4  ;;  %s136_s12 = int_to_ptr.vmem [resolvable:$true] %s135_s12 }
  0x29   :  { %v145_v9 = vld [vmem:[%s325_s2] ss:$0 sm:$0xff]  ;;  %s221_s13 = scalar_lea.vmem %s136_s12, 128  ;;  %p226_p3 = scmp.lt.s32.totalorder %s136_s12, %s136_s12 }
  0x2a   :  { %165 = vmatpush3.bf16.msra.mxu0 %v164_v5  ;;  %p222_p2 = scmp.ne.s32.totalorder %s136_s12, %s221_s13  ;;  %p227_p4 = scmp.lt.s32.totalorder %s221_s13, %s221_s13 }
  0x2b   :  { %166 = vmatprep.subr.bf16.mxu0 %v253_v0 }
  0x2c   :  { %p228_p5 = por %p227_p4, %p226_p3 }
  0x2e   :  { %168 = vmatpush3.bf16.msra.mxu0 %v167_v7  ;;  %p229_p6 = pnand %p228_p5, %p222_p2 }
  0x31   :  { %161 = vmatmul.mubr.msk.f32.vlgmr.msra.gmra.mrb[0].mxu0 %vm53_vm1, %v41_v8 }
 0x104   :  { %v123_v10 = vpop.f32.mrb[0].mxu0 }
 0x105   :  { %v124_v11 = vadd.f32 %v145_v9, %v123_v10  ;;  %v162_v12 = vpop.f32.mrb[1].mxu0 }
 0x107   :  { %128 = vst.msk [vmem:[#allocation7] sm:$0xff] %vm127_vm2, %v124_v11 }
 0x108   :  { %232 = shalt.err (!%p229_p6)
}
 0x109   :  { %s233_s16 = scalar_lea.hbm %s326_s3, 128 }
 0x10a   :  { %p234_p7 = scmp.ne.s32.totalorder %s326_s3, %s233_s16  ;;  %p237_p8 = scmp.lt.u32.totalorder %s233_s16, %s326_s3 }
 0x10c   :  { %p239_p9 = pnand %p237_p8, %p234_p7 }
 0x10e   :  { %242 = shalt.err (!%p239_p9)
}
 0x10f   :  { %138 = dma.vmem_to_hbm [thread:$0]  %s136_s12, 128, %s326_s3, [#allocation4]  }
 0x110   :  { %247 = dma.done.wait [#allocation4], 128  }
 0x111   :  { %248 = vsyncadd [#allocation4], 4294967168 }
 0x112   :  { %142 = vsyncpa [#allocation3], 1 }
 0x113   :  { %143 = vsyncpa [#allocation6], 1 }
 0x114   :  { %144 = vsyncpa [#allocation4], 1 }

</bundles_post_ra>
